<compile_context>
chip_gen: v5e
topology: v5e:2x2
jax: 0.10.0
libtpu: 0.0.40
codegen_flags: <defaults>
</compile_context>

<pallas_src>
import jax
import jax.numpy as jnp
from jax.experimental import pallas as pl
from jax.experimental.pallas import tpu as pltpu

_LANE = 128


def _round_up(x, m):
    return ((x + m - 1) // m) * m


def _vmem_budget():
    """(vmem_limit_bytes, per-block byte budget) sized per TPU generation."""
    cap = 64 << 20                       # conservative default: v7x per-TC VMEM
    try:
        cap = int(getattr(pltpu.get_tpu_info(), "vmem_capacity_bytes", cap))
    except Exception:
        pass
    if cap <= (64 << 20):                # v7x-class: 64 MiB per TensorCore
        vmem_limit = 40 << 20
    else:                                # v5e / v6e: 128 MiB
        vmem_limit = 64 << 20
    return vmem_limit, vmem_limit // 2


def _plane_block(B, per_plane_bytes, budget_bytes):
    """Planes per grid step: the largest count fitting the VMEM budget, capped
    so the grid keeps >= 2 steps (megacore sharding + DMA/compute overlap)."""
    p = max(1, int(budget_bytes // max(per_plane_bytes, 1)))
    if B >= 2:
        p = min(p, max(1, B // 2))
    return min(p, B)
    # TODO(synk): row-strip tiling with a 1-row halo (grid over H) for planes
    # whose single-plane footprint exceeds the budget (very large images).


# --------------------------------------------------------------------------- #
# In-kernel separable 3x3 Sobel with implicit zero padding.                    #
# x: (P, H, Wp) f32 block of independent planes.  If Wp > w_valid, columns     #
# [w_valid:Wp) must be zero (they provide the horizontal zero boundary).       #
# Values at padded columns of the result are unspecified.                      #
# --------------------------------------------------------------------------- #
def _sobel_mag_block(x, *, w_valid, mask_lanes):
    _, H, Wp = x.shape
    # Vertical neighbours: XLU sublane rotation + hoisted boundary masks.
    row = jax.lax.broadcasted_iota(jnp.int32, (1, H, 1), 1)
    top_mask = row == 0
    bot_mask = row == (H - 1)
    x_up = jnp.where(top_mask, 0.0, pltpu.roll(x, shift=1, axis=1))      # x[i-1, j]
    x_dn = jnp.where(bot_mask, 0.0, pltpu.roll(x, shift=H - 1, axis=1))  # x[i+1, j]
    v1 = x_up + 2.0 * x + x_dn                                           # [1,2,1]^T smooth
    v2 = x_dn - x_up                                                     # [-1,0,1]^T diff
    # Horizontal neighbours: XLU lane rotation.  With Wp > w_valid the zero
    # padded columns supply the zero boundary for free.
    v1_l = pltpu.roll(v1, shift=1, axis=2)
    v1_r = pltpu.roll(v1, shift=Wp - 1, axis=2)
    v2_l = pltpu.roll(v2, shift=1, axis=2)
    v2_r = pltpu.roll(v2, shift=Wp - 1, axis=2)
    if mask_lanes:   # Wp == w_valid: lane wrap-around brings real data -> mask edges.
        col = jax.lax.broadcasted_iota(jnp.int32, (1, 1, Wp), 2)
        l_mask = col == 0
        r_mask = col == (w_valid - 1)
        v1_l = jnp.where(l_mask, 0.0, v1_l)
        v2_l = jnp.where(l_mask, 0.0, v2_l)
        v1_r = jnp.where(r_mask, 0.0, v1_r)
        v2_r = jnp.where(r_mask, 0.0, v2_r)
    gx = v1_r - v1_l                                                     # [-1,0,1] of smooth
    gy = v2_l + 2.0 * v2 + v2_r                                          # [1,2,1] of diff
    return jnp.sqrt(gx * gx + gy * gy)


# ------------------------------ Sobel magnitude ----------------------------- #
def _make_mag_kernel(W, Wp):
    mask_lanes = (Wp == W)

    def kernel(x_ref, mag_ref):
        mag_ref[...] = _sobel_mag_block(
            x_ref[...].astype(jnp.float32), w_valid=W, mask_lanes=mask_lanes)

    return kernel


def sobel_magnitude(img):
    """Depthwise 3x3 Sobel gradient magnitude.  img: (N, C, H, W) -> f32."""
    N, C, H, W = img.shape
    B = N * C
    Wp = W if W % _LANE == 0 else _round_up(W, _LANE)
    x = img.reshape(B, H, W)
    vmem_limit, budget = _vmem_budget()
    isz = jnp.dtype(x.dtype).itemsize
    # 2x double-buffered streams (input + f32 output) + ~8 live f32 temporaries.
    per_plane = 2 * H * Wp * (isz + 4) + 8 * 4 * H * Wp
    p = _plane_block(B, per_plane, budget)
    G = pl.cdiv(B, p)
    Bp = G * p
    if Bp > B or Wp > W:
        x = jnp.pad(x, ((0, Bp - B), (0, 0), (0, Wp - W)))
    out = pl.pallas_call(
        _make_mag_kernel(W, Wp),
        out_shape=jax.ShapeDtypeStruct((Bp, H, Wp), jnp.float32),
        grid_spec=pltpu.PrefetchScalarGridSpec(
            num_scalar_prefetch=0,
            grid=(G,),
            in_specs=[pl.BlockSpec((p, H, Wp), lambda g: (g, 0, 0))],
            out_specs=pl.BlockSpec((p, H, Wp), lambda g: (g, 0, 0)),
        ),
        compiler_params=pltpu.CompilerParams(
            dimension_semantics=("parallel",),
            vmem_limit_bytes=vmem_limit),
    )(x)
    return out[:B, :, :W].reshape(N, C, H, W)


# --------------------- fused Sobel + normalize + SSE ------------------------ #
def _make_loss_kernel(W, Wp, threshold):
    mask_lanes = (Wp == W)
    mask_cols = (Wp != W)
    apply_threshold = threshold > 0.0

    def kernel(scal_ref, x_ref, tgt_ref, psum_ref):
        inv_denom = scal_ref[0]
        mag = _sobel_mag_block(
            x_ref[...].astype(jnp.float32), w_valid=W, mask_lanes=mask_lanes)
        inp = mag * inv_denom
        if apply_threshold:
            inp = jnp.where(inp < jnp.float32(threshold), 0.0, inp)
        diff = inp - tgt_ref[...].astype(jnp.float32)
        if mask_cols:   # exclude padded lanes from the reduction
            col = jax.lax.broadcasted_iota(jnp.int32, (1, 1, Wp), 2)
            diff = jnp.where(col < W, diff, 0.0)
        # One partial sum per grid block (distinct output block -> parallel-safe).
        psum_ref[...] = jnp.sum(diff * diff, keepdims=True)

    return kernel


class SobelEdgeLoss:
    """JAX/Pallas port of cast/loss/l2.py::SobelEdgeLoss (forward pass)."""

    def __init__(self, target_img, normalize=True, threshold=0.0,
                 target_dtype=jnp.bfloat16):
        self.threshold = float(threshold)
        tgt = sobel_magnitude(target_img)                     # f(target_img)[0]
        if normalize:
            # NOTE: an all-zero/constant target gives max()==0 -> NaN, exactly
            # like the PyTorch reference.
            self.norm_denominator = jnp.max(tgt)
            tgt = tgt / self.norm_denominator
        else:
            self.norm_denominator = jnp.float32(1.0)
        self.inv_denominator = (jnp.float32(1.0) / self.norm_denominator).astype(jnp.float32)
        if self.threshold > 0.0:
            tgt = jnp.where(tgt < self.threshold, 0.0, tgt)
        # Normalized target lives in [0, 1]; store bf16 to halve HBM read
        # traffic of the mem-bound loss kernel (upcast to f32 in-kernel).
        self.target = tgt.astype(target_dtype)

    def __call__(self, img, features=None):
        N, C, H, W = img.shape
        B = N * C
        Wp = W if W % _LANE == 0 else _round_up(W, _LANE)
        x = img.reshape(B, H, W)                    # native dtype; upcast in-kernel
        tgt = self.target.reshape(B, H, W)
        vmem_limit, budget = _vmem_budget()
        isz_x = jnp.dtype(x.dtype).itemsize
        isz_t = jnp.dtype(tgt.dtype).itemsize
        # 2x double-buffered input streams + ~8 live f32 temporaries per plane.
        per_plane = 2 * H * Wp * (isz_x + isz_t) + 8 * 4 * H * Wp
        p = _plane_block(B, per_plane, budget)
        G = pl.cdiv(B, p)
        Bp = G * p
        if Bp > B or Wp > W:
            pad = ((0, Bp - B), (0, 0), (0, Wp - W))
            x = jnp.pad(x, pad)
            tgt = jnp.pad(tgt, pad)
        scal = jnp.reshape(self.inv_denominator, (1,)).astype(jnp.float32)
        psum = pl.pallas_call(
            _make_loss_kernel(W, Wp, self.threshold),
            out_shape=jax.ShapeDtypeStruct((G, 1, 1), jnp.float32),
            grid_spec=pltpu.PrefetchScalarGridSpec(
                num_scalar_prefetch=0,
                grid=(G,),
                in_specs=[
                    pl.BlockSpec(memory_space=pltpu.MemorySpace.SMEM),   # [1/denom]
                    pl.BlockSpec((p, H, Wp), lambda g: (g, 0, 0)),       # img planes
                    pl.BlockSpec((p, H, Wp), lambda g: (g, 0, 0)),       # target planes
                ],
                out_specs=pl.BlockSpec((1, 1, 1), lambda g: (g, 0, 0)),
            ),
            compiler_params=pltpu.CompilerParams(
                dimension_semantics=("parallel",),
                vmem_limit_bytes=vmem_limit),
        )(scal, x, tgt)
        # F.mse_loss default reduction='mean' over the real (unpadded) elements.
        return jnp.sum(psum) / jnp.float32(N * C * H * W)


# ------------------------------ pure-JAX refs -------------------------------- #
def _ref_sobel_mag(img):
    N, C, H, W = img.shape
    xp = jnp.pad(img.astype(jnp.float32), ((0, 0), (0, 0), (1, 1), (1, 1)))
    c = lambda dy, dx: xp[:, :, dy:dy + H, dx:dx + W]
    gx = (c(0, 2) + 2.0 * c(1, 2) + c(2, 2)) - (c(0, 0) + 2.0 * c(1, 0) + c(2, 0))
    gy = (c(2, 0) + 2.0 * c(2, 1) + c(2, 2)) - (c(0, 0) + 2.0 * c(0, 1) + c(0, 2))
    return jnp.sqrt(gx * gx + gy * gy)


def _ref_loss(img, target_img, threshold=0.0):
    tgt = _ref_sobel_mag(target_img)
    denom = jnp.max(tgt)
    tgt = tgt / denom
    tgt = jnp.where(tgt < threshold, 0.0, tgt)
    inp = _ref_sobel_mag(img) / denom
    inp = jnp.where(inp < threshold, 0.0, inp)
    return jnp.mean((inp - tgt) ** 2)


if __name__ == "__main__":
    keys = jax.random.split(jax.random.PRNGKey(0), 4)

    def run_case(shape, k1, k2, threshold=0.0):
        target_img = jax.random.uniform(k1, shape, dtype=jnp.float32)
        img = jax.random.uniform(k2, shape, dtype=jnp.float32)

        # Sobel-magnitude kernel vs. pure-JAX reference (exact stencil check).
        mag = jax.block_until_ready(sobel_magnitude(img))
        assert jnp.allclose(mag, _ref_sobel_mag(img), rtol=1e-5, atol=1e-5), "mag mismatch"

        loss_mod = SobelEdgeLoss(target_img, normalize=True, threshold=threshold)
        loss = jax.block_until_ready(loss_mod(img))

        # Tight check: same math in pure JAX with the module's stored (bf16) target.
        inp_ref = _ref_sobel_mag(img) * loss_mod.inv_denominator
        if threshold > 0.0:
            inp_ref = jnp.where(inp_ref < threshold, 0.0, inp_ref)
        tight = jnp.mean((inp_ref - loss_mod.target.astype(jnp.float32)) ** 2)
        assert jnp.allclose(loss, tight, rtol=1e-4, atol=1e-6), (loss, tight)

        # End-to-end vs. f32-target reference (bf16 target storage adds a small,
        # bounded quantization difference).
        full = _ref_loss(img, target_img, threshold=threshold)
        assert jnp.allclose(loss, full, rtol=5e-3, atol=1e-6), (loss, full)

    run_case((2, 4, 16, 16), keys[0], keys[1])   # W < 128  -> lane-padded path
    run_case((1, 5, 8, 128), keys[2], keys[3])   # W == 128 -> masked path + plane padding
    print("KERNEL_OK")
</pallas_src>

<mosaic_0001>
module attributes {stable_mosaic.version = 11 : i64} {
  func.func @kernel(%arg0: i32, %arg1: memref<4x16x128xf32, #tpu.memory_space<vmem>>, %arg2: memref<4x16x128xf32, #tpu.memory_space<vmem>>) attributes {dimension_semantics = [#tpu.dimension_semantics<parallel>], iteration_bounds = array<i64: 2>, scalar_prefetch = 0 : i64, scratch_operands = 0 : i64, tpu.core_type = #tpu.core_type<tc>, window_params = [{transform_indices = @transform_0, window_bounds = array<i64: 4, 16, 128>}, {transform_indices = @transform_1, window_bounds = array<i64: 4, 16, 128>}]} {
    %c0 = arith.constant 0 : index
    %c0_0 = arith.constant 0 : index
    %c0_1 = arith.constant 0 : index
    %0 = vector.load %arg1[%c0, %c0_0, %c0_1] : memref<4x16x128xf32, #tpu.memory_space<vmem>>, vector<4x16x128xf32>
    %1 = tpu.iota {dimensions = array<i32: 1>} : vector<1x16x1xi32>
    %c0_i32 = arith.constant 0 : i32
    %2 = vector.broadcast %c0_i32 : i32 to vector<1x16x1xi32>
    %3 = arith.cmpi eq, %1, %2 : vector<1x16x1xi32>
    %c15_i32 = arith.constant 15 : i32
    %4 = vector.broadcast %c15_i32 : i32 to vector<1x16x1xi32>
    %5 = arith.cmpi eq, %1, %4 : vector<1x16x1xi32>
    %c1_i32 = arith.constant 1 : i32
    %6 = tpu.dynamic_rotate %0 by %c1_i32 dim 1 : vector<4x16x128xf32>, i32 -> vector<4x16x128xf32>
    %cst = arith.constant 0.000000e+00 : f32
    %7 = vector.shape_cast %3 : vector<1x16x1xi1> to vector<1x16x1xi1>
    %8 = vector.broadcast %7 : vector<1x16x1xi1> to vector<4x16x128xi1>
    %9 = vector.broadcast %cst : f32 to vector<4x16x128xf32>
    %10 = arith.select %8, %9, %6 : vector<4x16x128xi1>, vector<4x16x128xf32>
    %c15_i32_2 = arith.constant 15 : i32
    %11 = tpu.dynamic_rotate %0 by %c15_i32_2 dim 1 : vector<4x16x128xf32>, i32 -> vector<4x16x128xf32>
    %cst_3 = arith.constant 0.000000e+00 : f32
    %12 = vector.shape_cast %5 : vector<1x16x1xi1> to vector<1x16x1xi1>
    %13 = vector.broadcast %12 : vector<1x16x1xi1> to vector<4x16x128xi1>
    %14 = vector.broadcast %cst_3 : f32 to vector<4x16x128xf32>
    %15 = arith.select %13, %14, %11 : vector<4x16x128xi1>, vector<4x16x128xf32>
    %cst_4 = arith.constant 2.000000e+00 : f32
    %16 = vector.broadcast %cst_4 : f32 to vector<4x16x128xf32>
    %17 = arith.mulf %16, %0 : vector<4x16x128xf32>
    %18 = arith.addf %10, %17 : vector<4x16x128xf32>
    %19 = arith.addf %18, %15 : vector<4x16x128xf32>
    %20 = arith.subf %15, %10 : vector<4x16x128xf32>
    %c1_i32_5 = arith.constant 1 : i32
    %21 = tpu.dynamic_rotate %19 by %c1_i32_5 dim 2 : vector<4x16x128xf32>, i32 -> vector<4x16x128xf32>
    %c127_i32 = arith.constant 127 : i32
    %22 = tpu.dynamic_rotate %19 by %c127_i32 dim 2 : vector<4x16x128xf32>, i32 -> vector<4x16x128xf32>
    %c1_i32_6 = arith.constant 1 : i32
    %23 = tpu.dynamic_rotate %20 by %c1_i32_6 dim 2 : vector<4x16x128xf32>, i32 -> vector<4x16x128xf32>
    %c127_i32_7 = arith.constant 127 : i32
    %24 = tpu.dynamic_rotate %20 by %c127_i32_7 dim 2 : vector<4x16x128xf32>, i32 -> vector<4x16x128xf32>
    %25 = arith.subf %22, %21 : vector<4x16x128xf32>
    %cst_8 = arith.constant 2.000000e+00 : f32
    %26 = vector.broadcast %cst_8 : f32 to vector<4x16x128xf32>
    %27 = arith.mulf %26, %20 : vector<4x16x128xf32>
    %28 = arith.addf %23, %27 : vector<4x16x128xf32>
    %29 = arith.addf %28, %24 : vector<4x16x128xf32>
    %30 = arith.mulf %25, %25 : vector<4x16x128xf32>
    %31 = arith.mulf %29, %29 : vector<4x16x128xf32>
    %32 = arith.addf %30, %31 : vector<4x16x128xf32>
    %33 = math.sqrt %32 : vector<4x16x128xf32>
    %c0_9 = arith.constant 0 : index
    %c0_10 = arith.constant 0 : index
    %c0_11 = arith.constant 0 : index
    %34 = vector.load %arg2[%c0_9, %c0_10, %c0_11] : memref<4x16x128xf32, #tpu.memory_space<vmem>>, vector<4x16x128xf32>
    tpu.vector_store %arg2[%c0_9, %c0_10, %c0_11], %33 {strides = array<i32>} : memref<4x16x128xf32, #tpu.memory_space<vmem>>, vector<4x16x128xf32>,
    return
  }
  func.func @transform_0(%arg0: i32) -> (i32, i32, i32) {
    %c0_i32 = arith.constant 0 : i32
    %c0_i32_0 = arith.constant 0 : i32
    %c0_i32_1 = arith.constant 0 : i32
    return %arg0, %c0_i32, %c0_i32_0 : i32, i32, i32
  }
  func.func @transform_1(%arg0: i32) -> (i32, i32, i32) {
    %c0_i32 = arith.constant 0 : i32
    %c0_i32_0 = arith.constant 0 : i32
    %c0_i32_1 = arith.constant 0 : i32
    return %arg0, %c0_i32, %c0_i32_0 : i32, i32, i32
  }
}

</mosaic_0001>

<bundles_post_ra>
// kernel: tpu_custom_call.1
= control target key start
LH: loop header
LB: loop body
LE: loop exit
PB: predicated region body
PF: predicated region fallthrough
CT: control target
= control target key end

     0   :  { %6 = vsyncpa [#allocation3], 0  ;;  %s1159_s0 = inlined_call_operand.hbm [shape: f32[8,16,128], index: 0, kind: input, shape index: {}]   ;;  %s1160_s1 = inlined_call_operand.hbm [shape: f32[8,16,128], index: 1, kind: output, shape index: {}]  }
   0x1   :  { %8 = vsyncpa [#allocation3 + $0x1], 0 }
   0x2   :  { %9 = vsyncpa [#allocation4], 0 }
   0x3   :  { %11 = vsyncpa [#allocation4 + $0x1], 0  ;;  %s761_s6 = smov 0   ;;  %s763_s7 = smov 0  }
   0x4   :  { %s765_s8 = smov 0   ;;  %s767_s9 = smov 0  }
   0x5 LB: > { %s782_s10 = sadd.s32 4294967295, %s743_s9   ;;  %s559_s11 = sadd.s32 4294967294, %s743_s9   ;;  %s743_s9 = sphi %s767_s9, %s1170_s9   ;;  %s739_s8 = sphi %s765_s8, %s1169_s8   ;;  %s735_s7 = sphi %s763_s7, %s1168_s7   ;;  %s731_s6 = sphi %s761_s6, %s1167_s6  }
   0x6   : > { %s786_s12 = sadd.s32 1, %s743_s9   ;;  %s24_s13 = sadd.s32 1, %s739_s8 }
   0x7   : > { %s21_s14 = ssub.s32 %s743_s9, %s786_s12  ;;  %p31_p0 = scmp.ne.s32.totalorder %s739_s8, %s735_s7 }
   0x8   : > { %p22_p1 = scmp.eq.s32.totalorder %s21_s14, 0  ;;  %p32_p2 = scmp.eq.s32.totalorder %s743_s9, 0 }
   0x9   : > { %p37_p3 = scmp.ne.s32.totalorder %s735_s7, %s731_s6  ;;  %p38_p4 = scmp.eq.s32.totalorder %s782_s10, 0 }
   0xa   : > { %s798_s15 = scalar_select %p22_p1, %s739_s8, %s24_s13  }
   0xb   : > { %p800_p5 = por %p32_p2, %p31_p0  ;;  %p804_p6 = por %p38_p4, %p37_p3 }
   0xc   : > { %p61_p7 = scmp.eq.s32.totalorder %s782_s10, 1  ;;  %p67_p8 = scmp.eq.s32.totalorder %s559_s11, 1 }
   0xd   : > { %p591_p10 = scmp.lt.s32.totalorder %s743_s9, 2  ;;  %s87_s20 = sand.u32 1, %s739_s8  }
   0xe   : > { %p811_p11 = por %p61_p7, %p31_p0  ;;  %p815_p12 = por %p67_p8, %p37_p3 }
   0xf   : > { %s576_s21 = sshll.u32 %s743_s9, 6  ;;  %s562_s22 = sshll.u32 %s87_s20, 6 }
  0x10   : > { %s97_s25 = scalar_lea.hbm %s1159_s0, %s576_s21  ;;  %s91_s27 = scalar_lea.vmem [#allocation2], %s562_s22 }
  0x11   : > { %s98_s26 = sshll.u32 %s97_s25, 4  ;;  %s100_s28 = sshll.u32 %s91_s27, 4  ;;  %s99_s26 = int_to_ptr.hbm [resolvable:$true] %s98_s26  ;;  %s101_s28 = int_to_ptr.vmem [resolvable:$true] %s100_s28 }
  0x12   : > { %p826_p13 = pnand %p591_p10, %p800_p5  ;;  %p566_p0 = scmp.ge.s32.totalorder %s743_s9, 1 }
  0x13   : > { %p108_p1 = scmp.lt.s32.totalorder %s743_s9, 3  ;;  %s88_s30 = scalar_lea.sflag [#allocation3], %s87_s20 }
  0x14   : > { %s647_s2 = sshra.s32 %s99_s26, 4  ;;  %p651_p3 = pneg %p826_p13  ;;  %s648_s2 = int_to_ptr.hbm [resolvable:$true] %s647_s2 }
  0x15   : > { %s649_s3 = scalar_lea.hbm %s648_s2, 64  ;;  %s654_s11 = scalar_lea.hbm %s1159_s0, 128 }
  0x16   : > { %p650_p2 = scmp.ne.s32.totalorder %s648_s2, %s649_s3  ;;  %p655_p5 = scmp.lt.s32.totalorder %s648_s2, %s1159_s0 }
  0x17   : > { %p656_p8 = scmp.lt.s32.totalorder %s654_s11, %s649_s3 }
  0x18   : > { %p652_p4 = pnand %p651_p3, %p650_p2 }
  0x19   : > { %p657_p10 = por %p656_p8, %p655_p5 }
  0x1a   : > { %p653_p7 = pneg %p652_p4 }
  0x1c   : > { %p658_p9 = pnand %p657_p10, %p653_p7 }
  0x1e   : > { %661 = shalt.err (!%p658_p9)
}
  0x1f   : > { %s745_s16 = smov 128   ;;  %s746_s20 = smov 8  }
  0x20   : > { %586 = dma.hbm_to_vmem [thread:$0]  (!%p826_p13), %s99_s26, 1024, %s101_s28, %s88_s30, %s745_s16, %s745_s16, %s746_s20  }
  0x21   : > { %p109_p2 = pnand %p566_p0, %p108_p1 }
  0x22   : > { %s847_s21 = sand.u32 (!%p109_p2), 1, %s735_s7  }
  0x23   : > { %112 = sbr.rel (%p109_p2) target bundleno = 281 (0x119), region = 24  ;;  %s567_s22 = sshll.u32 (!%p109_p2), %s847_s21, 6 }
  0x24   : > { %s115_s23 = scalar_lea.sflag (!%p109_p2), [#allocation3], %s847_s21  ;;  %s853_s24 = scalar_lea.vmem (!%p109_p2), [#allocation2], %s567_s22 }
  0x28   : > { %722 = dma.done.wait (%p804_p6), %s115_s23, 1024  }
  0x29   : > { %724 = vsyncadd (%p804_p6), %s115_s23, 4294966272  ;;  %v148_v0 = vlaneseq  ;;  %v144_v3 = vld [vmem:[%s853_s24 + $0x20] sm:$0xff]  ;;  %v145_v4 = vld [vmem:[%s853_s24 + $0x28] sm:$0xff]  ;;  %s747_s17 = smov 1   ;;  %s748_s25 = smov 127  }
  0x2a   : > { %v870_v5 = vld [vmem:[%s853_s24 + $0x10] sm:$0xff]  ;;  %v157_v6 = vrot.slane %v144_v3, 7  ;;  %v161_v7 = vrot.slane %v145_v4, 7  ;;  %v186_v8 = vrot.slane %v144_v3, 1  ;;  %v190_v9 = vrot.slane %v145_v4, 1  ;;  %v873_v10 = vld [vmem:[%s853_s24 + $0x18] sm:$0xff] }
  0x2b   : > { %v859_v1 = vshrl.u32 %v148_v0, 7  ;;  %v140_v11 = vld [vmem:[%s853_s24] sm:$0xff]  ;;  %v218_v12 = vmul.f32 2.0, %v145_v4  ;;  %v156_v13 = vrot.slane %v870_v5, 7  ;;  %v160_v14 = vrot.slane %v873_v10, 7  ;;  %v141_v16 = vld [vmem:[%s853_s24 + $0x8] sm:$0xff] }
  0x2c   : > { %v185_v15 = vrot.slane %v870_v5, 1  ;;  %v189_v19 = vrot.slane %v873_v10, 1  ;;  %v216_v20 = vmul.f32 2.0, %v873_v10  ;;  %v155_v24 = vrot.slane %v140_v11, 7  ;;  %v146_v32 = vld [vmem:[%s853_s24 + $0x30] sm:$0xff]  ;;  %v147_v36 = vld [vmem:[%s853_s24 + $0x38] sm:$0xff] }
  0x2d   : > { %v862_v2 = vadd.s32 8, %v859_v1  ;;  %vm163_vm1 = vcmp.lt.s32.totalorder %v859_v1, 1  ;;  %vm192_vm2 = vcmp.lt.s32.totalorder %v859_v1, 7  ;;  %v159_v27 = vrot.slane %v141_v16, 7  ;;  %s1062_s26 = scalar_lea.vmem [#allocation5], %s567_s22  ;;  %s578_s27 = sshll.u32 %s782_s10, 6 }
  0x2e   : > { %v882_v17 = vsel %vm163_vm1, %v157_v6, %v161_v7  ;;  %v199_v18 = vsel %vm192_vm2, %v190_v9, %v186_v8  ;;  %v895_v23 = vsel %vm163_vm1, %v156_v13, %v160_v14  ;;  %v198_v25 = vsel %vm192_vm2, %v189_v19, %v185_v15  ;;  %s482_s30 = scalar_lea.hbm %s1160_s1, %s578_s27  ;;  %s483_s10 = sshll.u32 %s1062_s26, 4  ;;  %s484_s10 = int_to_ptr.vmem [resolvable:$true] %s483_s10 }
  0x2f   : > { %vm154_vm0 = vcmp.eq.s32.totalorder %v862_v2, 15  ;;  %v226_v22 = vadd.f32 %v218_v12, %v882_v17  ;;  %v224_v26 = vadd.f32 %v216_v20, %v895_v23  ;;  %vm151_vm3 = vcmp.eq.s32.totalorder %v859_v1, 0  ;;  %s485_s2 = sshll.u32 %s482_s30, 4  ;;  %s470_s3 = scalar_lea.sflag [#allocation4], %s847_s21  ;;  %s486_s2 = int_to_ptr.hbm [resolvable:$true] %s485_s2 }
  0x30   : > { %v890_v21 = vsel %vm154_vm0, 0.0, %v199_v18  ;;  %v906_v29 = vsel %vm154_vm0, 0.0, %v198_v25  ;;  %v184_v30 = vrot.slane %v140_v11, 1  ;;  %v188_v31 = vrot.slane %v141_v16, 1  ;;  %s691_s4 = sshra.s32 %s486_s2, 4  ;;  %s697_s14 = scalar_lea.hbm %s1160_s1, 128  ;;  %s692_s4 = int_to_ptr.hbm [resolvable:$true] %s691_s4 }
  0x31   : > { %v902_v28 = vadd.f32 %v226_v22, %v890_v21  ;;  %v910_v33 = vadd.f32 %v224_v26, %v906_v29  ;;  %v164_v34 = vsel %vm163_vm1, %v155_v24, %v159_v27  ;;  %v214_v35 = vmul.f32 2.0, %v141_v16  ;;  %s693_s5 = scalar_lea.hbm %s692_s4, 64  ;;  %p698_p0 = scmp.lt.s32.totalorder %s692_s4, %s1160_s1 }
  0x32   : > { %v197_v37 = vsel %vm192_vm2, %v188_v31, %v184_v30  ;;  %v170_v38 = vsel %vm163_vm1, %v161_v7, %v157_v6  ;;  %v195_v39 = vsel %vm192_vm2, %v186_v8, %v190_v9  ;;  %v217_v40 = vmul.f32 2.0, %v144_v3  ;;  %p694_p6 = scmp.ne.s32.totalorder %s692_s4, %s693_s5  ;;  %p699_p1 = scmp.lt.s32.totalorder %s697_s14, %s693_s5 }
  0x33   : > { %255 = vrot.lane.b32.xlu2 %v902_v28, %s747_s17  ;;  %251 = vrot.lane.b32.xlu1 %v910_v33, %s747_s17  ;;  %v206_v41 = vsel %vm154_vm0, 0.0, %v197_v37  ;;  %v222_v42 = vadd.f32 %v214_v35, %v164_v34  ;;  %v180_v43 = vsel %vm151_vm3, 0.0, %v170_v38  ;;  %v158_v44 = vrot.slane %v146_v32, 7 }
  0x34   : > { %v225_v45 = vadd.f32 %v217_v40, %v180_v43  ;;  %v162_v46 = vrot.slane %v147_v36, 7  ;;  %v187_v47 = vrot.slane %v146_v32, 1  ;;  %v191_v49 = vrot.slane %v147_v36, 1  ;;  %p695_p9 = pnand %p694_p6, %p811_p11  ;;  %p700_p3 = por %p699_p1, %p698_p0 }
  0x35   : > { %v230_v48 = vadd.f32 %v222_v42, %v206_v41  ;;  %v220_v50 = vmul.f32 2.0, %v147_v36  ;;  %v168_v51 = vsel %vm163_vm1, %v159_v27, %v155_v24  ;;  %v213_v57 = vmul.f32 2.0, %v140_v11 }
  0x36   : > { %v233_v52 = vadd.f32 %v225_v45, %v195_v39  ;;  %v167_v53 = vsel %vm163_vm1, %v158_v44, %v162_v46  ;;  %v176_v54 = vsel %vm151_vm3, 0.0, %v168_v51  ;;  %v200_v55 = vsel %vm192_vm2, %v191_v49, %v187_v47  ;;  %p696_p13 = pneg %p695_p9 }
  0x37   : > { %247 = vrot.lane.b32.xlu0 %v230_v48, %s747_s17  ;;  %v228_v56 = vadd.f32 %v220_v50, %v167_v53  ;;  %v169_v58 = vsel %vm163_vm1, %v160_v14, %v156_v13  ;;  %v212_v59 = vsel %vm154_vm0, 0.0, %v200_v55  ;;  %v193_v60 = vsel %vm192_vm2, %v184_v30, %v188_v31 }
  0x38   : > { %v178_v61 = vsel %vm151_vm3, 0.0, %v169_v58  ;;  %v215_v62 = vmul.f32 2.0, %v870_v5  ;;  %v221_v0 = vadd.f32 %v213_v57, %v176_v54  ;;  %v171_v3 = vsel %vm163_vm1, %v162_v46, %v158_v44  ;;  %p701_p4 = pnand %p700_p3, %p696_p13 }
  0x39   : > { %v236_v63 = vadd.f32 %v228_v56, %v212_v59  ;;  %v219_v6 = vmul.f32 2.0, %v146_v32  ;;  %v194_v7 = vsel %vm192_vm2, %v185_v15, %v189_v19  ;;  %v182_v8 = vsel %vm151_vm3, 0.0, %v171_v3 }
  0x3a   : > { %v229_v4 = vadd.f32 %v221_v0, %v193_v60  ;;  %v223_v2 = vadd.f32 %v215_v62, %v178_v61  ;;  %v196_v10 = vsel %vm192_vm2, %v187_v47, %v191_v49  ;;  %v239_v12 = vsub.f32 %v194_v7, %v178_v61 }
  0x3b   : > { %253 = vrot.lane.b32.xlu2 %v233_v52, %s747_s17  ;;  %259 = vrot.lane.b32.xlu1 %v236_v63, %s747_s17  ;;  %v227_v9 = vadd.f32 %v219_v6, %v182_v8  ;;  %v960_v13 = vsub.f32 %v206_v41, %v164_v34  ;;  %v966_v14 = vsub.f32 %v193_v60, %v176_v54 }
  0x3c   : > { %v231_v5 = vadd.f32 %v223_v2, %v194_v7  ;;  %v242_v1 = vsub.f32 %v890_v21, %v882_v17  ;;  %v972_v15 = vsub.f32 %v195_v39, %v180_v43  ;;  %v977_v16 = vsub.f32 %v906_v29, %v895_v23 }
  0x3d   : > { %v235_v11 = vadd.f32 %v227_v9, %v196_v10  ;;  %v983_v18 = vsub.f32 %v212_v59, %v167_v53  ;;  %v988_v17 = vsub.f32 %v196_v10, %v182_v8  ;;  %v319_v39 = vmul.f32 2.0, %v239_v12 }
  0x3e   : > { %v322_v45 = vmul.f32 2.0, %v242_v1  ;;  %v318_v53 = vmul.f32 2.0, %v960_v13  ;;  %v317_v58 = vmul.f32 2.0, %v966_v14  ;;  %v321_v7 = vmul.f32 2.0, %v972_v15 }
  0x3f   : > { %245 = vrot.lane.b32.xlu0 %v229_v4, %s747_s17 }
  0x43   : > { %261 = vrot.lane.b32.xlu2 %v229_v4, %s748_s25  ;;  %249 = vrot.lane.b32.xlu1 %v231_v5, %s747_s17 }
  0x47   : > { %257 = vrot.lane.b32.xlu0 %v235_v11, %s747_s17 }
  0x4b   : > { %281 = vrot.lane.b32.xlu2 %v239_v12, %s747_s17  ;;  %279 = vrot.lane.b32.xlu1 %v960_v13, %s747_s17 }
  0x4f   : > { %277 = vrot.lane.b32.xlu0 %v966_v14, %s747_s17 }
  0x53   : > { %287 = vrot.lane.b32.xlu2 %v242_v1, %s747_s17  ;;  %285 = vrot.lane.b32.xlu1 %v972_v15, %s747_s17 }
  0x57   : > { %283 = vrot.lane.b32.xlu0 %v977_v16, %s747_s17 }
  0x5b   : > { %263 = vrot.lane.b32.xlu2 %v230_v48, %s748_s25  ;;  %291 = vrot.lane.b32.xlu1 %v983_v18, %s747_s17 }
  0x5f   : > { %289 = vrot.lane.b32.xlu0 %v988_v17, %s747_s17 }
  0x63   : > { %269 = vrot.lane.b32.xlu2 %v233_v52, %s748_s25  ;;  %267 = vrot.lane.b32.xlu1 %v910_v33, %s748_s25 }
  0x67   : > { %265 = vrot.lane.b32.xlu0 %v231_v5, %s748_s25 }
  0x6b   : > { %275 = vrot.lane.b32.xlu2 %v236_v63, %s748_s25  ;;  %273 = vrot.lane.b32.xlu1 %v235_v11, %s748_s25 }
  0x6f   : > { %271 = vrot.lane.b32.xlu0 %v902_v28, %s748_s25 }
  0x73   : > { %297 = vrot.lane.b32.xlu2 %v239_v12, %s748_s25  ;;  %295 = vrot.lane.b32.xlu1 %v960_v13, %s748_s25  ;;  %v320_v12 = vmul.f32 2.0, %v977_v16 }
  0x77   : > { %293 = vrot.lane.b32.xlu0 %v966_v14, %s748_s25 }
  0x7b   : > { %303 = vrot.lane.b32.xlu2 %v242_v1, %s748_s25  ;;  %301 = vrot.lane.b32.xlu1 %v972_v15, %s748_s25 }
  0x7f   : > { %299 = vrot.lane.b32.xlu0 %v977_v16, %s748_s25 }
  0x83   : > { %307 = vrot.lane.b32.xlu1 %v983_v18, %s748_s25 }
  0x87   : > { %305 = vrot.lane.b32.xlu0 %v988_v17, %s748_s25 }
  0x8d   : > { %v256_v19 = vpop.permute.xlu2 %255 }
  0x95   : > { %v254_v20 = vpop.permute.xlu2 %253 }
  0x9d   : > { %v262_v21 = vpop.permute.xlu2 %261 }
  0xa5   : > { %v282_v22 = vpop.permute.xlu2 %281  ;;  %v1014_v23 = vpop.permute.xlu1 %251 }
  0xa6   : > { %v327_v42 = vadd.f32 %v319_v39, %v282_v22 }
  0xa9   : > { %v248_v24 = vpop.permute.xlu0 %247 }
  0xad   : > { %v288_v25 = vpop.permute.xlu2 %287  ;;  %v1016_v26 = vpop.permute.xlu1 %259 }
  0xae   : > { %v330_v51 = vadd.f32 %v322_v45, %v288_v25 }
  0xb1   : > { %v246_v27 = vpop.permute.xlu0 %245 }
  0xb2   : > { %v309_v2 = vsub.f32 %v262_v21, %v246_v27  ;;  %v324_v27 = vmul.f32 2.0, %v983_v18 }
  0xb4   : > { %v341_v1 = vmul.f32 %v309_v2, %v309_v2 }
  0xb5   : > { %v250_v28 = vpop.permute.xlu1 %249  ;;  %v264_v29 = vpop.permute.xlu2 %263 }
  0xb6   : > { %v310_v61 = vsub.f32 %v264_v29, %v248_v24 }
  0xb8   : > { %v342_v8 = vmul.f32 %v310_v61, %v310_v61 }
  0xb9   : > { %v1018_v30 = vpop.permute.xlu0 %257 }
  0xbd   : > { %v280_v31 = vpop.permute.xlu1 %279  ;;  %v270_v32 = vpop.permute.xlu2 %269 }
  0xbe   : > { %v326_v57 = vadd.f32 %v318_v53, %v280_v31  ;;  %v323_v31 = vmul.f32 2.0, %v988_v17 }
  0xc1   : > { %v278_v33 = vpop.permute.xlu0 %277 }
  0xc2   : > { %v325_v6 = vadd.f32 %v317_v58, %v278_v33 }
  0xc5   : > { %v286_v34 = vpop.permute.xlu1 %285  ;;  %v1020_v35 = vpop.permute.xlu2 %275 }
  0xc6   : > { %v329_v22 = vadd.f32 %v321_v7, %v286_v34 }
  0xc9   : > { %v284_v36 = vpop.permute.xlu0 %283 }
  0xcd   : > { %v1022_v37 = vpop.permute.xlu1 %291  ;;  %v298_v40 = vpop.permute.xlu2 %297 }
  0xce   : > { %v335_v43 = vadd.f32 %v327_v42, %v298_v40  ;;  %v328_v40 = vadd.f32 %v320_v12, %v284_v36  ;;  %v332_v17 = vadd.f32 %v324_v27, %v1022_v37 }
  0xd0   : > { %v351_v47 = vmul.f32 %v335_v43, %v335_v43 }
  0xd1   : > { %v1024_v38 = vpop.permute.xlu0 %289 }
  0xd5   : > { %v268_v41 = vpop.permute.xlu1 %267  ;;  %v304_v49 = vpop.permute.xlu2 %303 }
  0xd6   : > { %v338_v54 = vadd.f32 %v330_v51, %v304_v49 }
  0xd8   : > { %v354_v59 = vmul.f32 %v338_v54, %v338_v54 }
  0xd9   : > { %v266_v44 = vpop.permute.xlu0 %265 }
  0xda   : > { %v311_v46 = vsub.f32 %v266_v44, %v250_v28 }
  0xdc   : > { %v343_v48 = vmul.f32 %v311_v46, %v311_v46 }
  0xdd   : > { %v1026_v50 = vpop.permute.xlu1 %273 }
  0xde   : > { %v1028_v52 = vadd.f32 %v351_v47, %v343_v48  ;;  %v315_v37 = vsub.f32 %v1026_v50, %v1018_v30 }
  0xe0   : > { %631 = vrsqrt.f32 %v1028_v52  ;;  %vm396_vm4 = vcmp.eq.f32.partialorder %v1028_v52, inf  ;;  %v399_v44 = vand.u32 2147483648, %v1028_v52  ;;  %vm398_vm5 = vcmp.eq.f32.partialorder %v1028_v52, 0.0 }
  0xe1   : > { %v272_v55 = vpop.permute.xlu0 %271  ;;  %v347_v61 = vmul.f32 %v315_v37, %v315_v37 }
  0xe2   : > { %v314_v56 = vsub.f32 %v272_v55, %v256_v19  ;;  %v313_v19 = vsub.f32 %v270_v32, %v254_v20  ;;  %v312_v20 = vsub.f32 %v268_v41, %v1014_v23  ;;  %v316_v32 = vsub.f32 %v1020_v35, %v1016_v26 }
  0xe4   : > { %v346_v60 = vmul.f32 %v314_v56, %v314_v56  ;;  %v345_v39 = vmul.f32 %v313_v19, %v313_v19  ;;  %v344_v35 = vmul.f32 %v312_v20, %v312_v20  ;;  %v348_v58 = vmul.f32 %v316_v32, %v316_v32 }
  0xe5   : > { %v296_v62 = vpop.permute.xlu1 %295 }
  0xe6   : > { %v632_v63 = vpop.eup %631  ;;  %v1033_v0 = vadd.f32 %v354_v59, %v346_v60  ;;  %v334_v3 = vadd.f32 %v326_v57, %v296_v62  ;;  %v331_v59 = vadd.f32 %v323_v31, %v1024_v38 }
  0xe7   : > { %v390_v4 = vmul.f32 %v632_v63, %v1028_v52 }
  0xe8   : > { %633 = vrsqrt.f32 %v1033_v0  ;;  %v350_v9 = vmul.f32 %v334_v3, %v334_v3  ;;  %vm432_vm6 = vcmp.eq.f32.partialorder %v1033_v0, inf  ;;  %v435_v3 = vand.u32 2147483648, %v1033_v0 }
  0xe9   : > { %v391_v5 = vmul.f32 %v632_v63, %v390_v4  ;;  %v294_v10 = vpop.permute.xlu0 %293  ;;  %vm434_vm7 = vcmp.eq.f32.partialorder %v1033_v0, 0.0 }
  0xea   : > { %v333_v11 = vadd.f32 %v325_v6, %v294_v10  ;;  %v1039_v14 = vadd.f32 %v350_v9, %v342_v8 }
  0xeb   : > { %v392_v13 = vmul.f32 0.5, %v391_v5 }
  0xec   : > { %v349_v24 = vmul.f32 %v333_v11, %v333_v11  ;;  %635 = vrsqrt.f32 %v1039_v14  ;;  %vm384_vm8 = vcmp.eq.f32.partialorder %v1039_v14, inf  ;;  %vm386_vm9 = vcmp.eq.f32.partialorder %v1039_v14, 0.0 }
  0xed   : > { %v393_v21 = vsub.f32 1.5, %v392_v13  ;;  %v302_v15 = vpop.permute.xlu1 %301 }
  0xee   : > { %v634_v25 = vpop.eup %633  ;;  %v1043_v28 = vadd.f32 %v349_v24, %v341_v1  ;;  %v337_v29 = vadd.f32 %v329_v22, %v302_v15 }
  0xef   : > { %v394_v16 = vmul.f32 %v632_v63, %v393_v21  ;;  %v426_v33 = vmul.f32 %v634_v25, %v1033_v0 }
  0xf0   : > { %637 = vrsqrt.f32 %v1043_v28  ;;  %v353_v42 = vmul.f32 %v337_v29, %v337_v29  ;;  %vm372_vm10 = vcmp.eq.f32.partialorder %v1043_v28, inf  ;;  %vm374_vm11 = vcmp.eq.f32.partialorder %v1043_v28, 0.0 }
  0xf1   : > { %v395_v34 = vmul.f32 %v394_v16, %v1028_v52  ;;  %v427_v18 = vmul.f32 %v634_v25, %v426_v33  ;;  %v300_v43 = vpop.permute.xlu0 %299  ;;  %v375_v16 = vand.u32 2147483648, %v1043_v28 }
  0xf2   : > { %v336_v36 = vadd.f32 %v328_v40, %v300_v43  ;;  %v636_v45 = vpop.eup %635  ;;  %v1057_v26 = vadd.f32 %v353_v42, %v345_v39 }
  0xf3   : > { %v397_v23 = vsel %vm396_vm4, %v1028_v52, %v395_v34  ;;  %v428_v41 = vmul.f32 0.5, %v427_v18  ;;  %v378_v47 = vmul.f32 %v636_v45, %v1039_v14 }
  0xf4   : > { %v400_v46 = vsel %vm398_vm5, %v399_v44, %v397_v23  ;;  %v352_v48 = vmul.f32 %v336_v36, %v336_v36  ;;  %639 = vrsqrt.f32 %v1057_v26  ;;  %vm420_vm12 = vcmp.eq.f32.partialorder %v1057_v26, inf }
  0xf5   : > { %463 = vst [vmem:[%s1062_s26 + $0x10] sm:$0xff] %v400_v46  ;;  %v429_v49 = vsub.f32 1.5, %v428_v41  ;;  %v308_v51 = vpop.permute.xlu1 %307  ;;  %v379_v53 = vmul.f32 %v636_v45, %v378_v47  ;;  %v423_v44 = vand.u32 2147483648, %v1057_v26  ;;  %vm422_vm13 = vcmp.eq.f32.partialorder %v1057_v26, 0.0 }
  0xf6   : > { %v638_v52 = vpop.eup %637  ;;  %v1068_v54 = vadd.f32 %v352_v48, %v344_v35  ;;  %v340_v55 = vadd.f32 %v332_v17, %v308_v51 }
  0xf7   : > { %v430_v56 = vmul.f32 %v634_v25, %v429_v49  ;;  %v366_v57 = vmul.f32 %v638_v52, %v1043_v28  ;;  %v380_v60 = vmul.f32 0.5, %v379_v53 }
  0xf8   : > { %641 = vrsqrt.f32 %v1068_v54  ;;  %v356_v62 = vmul.f32 %v340_v55, %v340_v55  ;;  %vm408_vm14 = vcmp.eq.f32.partialorder %v1068_v54, inf  ;;  %v411_v47 = vand.u32 2147483648, %v1068_v54 }
  0xf9   : > { %v431_v30 = vmul.f32 %v430_v56, %v1033_v0  ;;  %v367_v50 = vmul.f32 %v638_v52, %v366_v57  ;;  %v306_v63 = vpop.permute.xlu0 %305  ;;  %v381_v4 = vsub.f32 1.5, %v380_v60  ;;  %vm410_vm15 = vcmp.eq.f32.partialorder %v1068_v54, 0.0 }
  0xfa   : > { %v339_v2 = vadd.f32 %v331_v59, %v306_v63  ;;  %v640_v6 = vpop.eup %639  ;;  %v1078_v8 = vadd.f32 %v356_v62, %v348_v58 }
  0xfb   : > { %v433_v7 = vsel %vm432_vm6, %v1033_v0, %v431_v30  ;;  %v368_v38 = vmul.f32 0.5, %v367_v50  ;;  %v382_v9 = vmul.f32 %v636_v45, %v381_v4  ;;  %v414_v10 = vmul.f32 %v640_v6, %v1057_v26 }
  0xfc   : > { %v436_v5 = vsel %vm434_vm7, %v435_v3, %v433_v7  ;;  %v355_v11 = vmul.f32 %v339_v2, %v339_v2  ;;  %643 = vrsqrt.f32 %v1078_v8  ;;  %v387_v0 = vand.u32 2147483648, %v1039_v14 }
  0xfd   : > { %466 = vst [vmem:[%s1062_s26 + $0x28] sm:$0xff] %v436_v5  ;;  %v369_v12 = vsub.f32 1.5, %v368_v38  ;;  %v383_v1 = vmul.f32 %v382_v9, %v1039_v14  ;;  %v415_v19 = vmul.f32 %v640_v6, %v414_v10  ;;  %vm456_vm0 = vcmp.eq.f32.partialorder %v1078_v8, inf }
  0xfe   : > { %v642_v13 = vpop.eup %641  ;;  %v1084_v22 = vadd.f32 %v355_v11, %v347_v61  ;;  %v459_v55 = vand.u32 2147483648, %v1078_v8  ;;  %vm458_vm1 = vcmp.eq.f32.partialorder %v1078_v8, 0.0 }
  0xff   : > { %v370_v24 = vmul.f32 %v638_v52, %v369_v12  ;;  %v402_v21 = vmul.f32 %v642_v13, %v1068_v54  ;;  %v385_v15 = vsel %vm384_vm8, %v1039_v14, %v383_v1  ;;  %v416_v25 = vmul.f32 0.5, %v415_v19 }
 0x100   : > { %645 = vrsqrt.f32 %v1084_v22  ;;  %v388_v27 = vsel %vm386_vm9, %v387_v0, %v385_v15  ;;  %vm444_vm2 = vcmp.eq.f32.partialorder %v1084_v22, inf  ;;  %v447_v59 = vand.u32 2147483648, %v1084_v22 }
 0x101   : > { %v371_v29 = vmul.f32 %v370_v24, %v1043_v28  ;;  %v403_v31 = vmul.f32 %v642_v13, %v402_v21  ;;  %462 = vst [vmem:[%s1062_s26 + $0x8] sm:$0xff] %v388_v27  ;;  %v417_v33 = vsub.f32 1.5, %v416_v25  ;;  %vm446_vm3 = vcmp.eq.f32.partialorder %v1084_v22, 0.0 }
 0x102   : > { %v644_v39 = vpop.eup %643 }
 0x103   : > { %v373_v40 = vsel %vm372_vm10, %v1043_v28, %v371_v29  ;;  %v404_v14 = vmul.f32 0.5, %v403_v31  ;;  %v418_v32 = vmul.f32 %v640_v6, %v417_v33  ;;  %v450_v34 = vmul.f32 %v644_v39, %v1078_v8 }
 0x104   : > { %v376_v20 = vsel %vm374_vm11, %v375_v16, %v373_v40 }
 0x105   : > { %461 = vst [vmem:[%s1062_s26] sm:$0xff] %v376_v20  ;;  %v405_v18 = vsub.f32 1.5, %v404_v14  ;;  %v419_v43 = vmul.f32 %v418_v32, %v1057_v26  ;;  %v451_v17 = vmul.f32 %v644_v39, %v450_v34 }
 0x106   : > { %v646_v42 = vpop.eup %645 }
 0x107   : > { %v406_v36 = vmul.f32 %v642_v13, %v405_v18  ;;  %v438_v28 = vmul.f32 %v646_v42, %v1084_v22  ;;  %v421_v45 = vsel %vm420_vm12, %v1057_v26, %v419_v43  ;;  %v452_v23 = vmul.f32 0.5, %v451_v17 }
 0x108   : > { %v424_v41 = vsel %vm422_vm13, %v423_v44, %v421_v45 }
 0x109   : > { %v407_v35 = vmul.f32 %v406_v36, %v1068_v54  ;;  %v439_v46 = vmul.f32 %v646_v42, %v438_v28  ;;  %465 = vst [vmem:[%s1062_s26 + $0x20] sm:$0xff] %v424_v41  ;;  %v453_v48 = vsub.f32 1.5, %v452_v23 }
 0x10b   : > { %v409_v37 = vsel %vm408_vm14, %v1068_v54, %v407_v35  ;;  %v440_v49 = vmul.f32 0.5, %v439_v46  ;;  %v454_v51 = vmul.f32 %v644_v39, %v453_v48 }
 0x10c   : > { %v412_v26 = vsel %vm410_vm15, %v411_v47, %v409_v37 }
 0x10d   : > { %464 = vst [vmem:[%s1062_s26 + $0x18] sm:$0xff] %v412_v26  ;;  %v441_v52 = vsub.f32 1.5, %v440_v49  ;;  %v455_v53 = vmul.f32 %v454_v51, %v1078_v8 }
 0x10f   : > { %v442_v56 = vmul.f32 %v646_v42, %v441_v52  ;;  %v457_v54 = vsel %vm456_vm0, %v1078_v8, %v455_v53 }
 0x110   : > { %v460_v57 = vsel %vm458_vm1, %v459_v55, %v457_v54 }
 0x111   : > { %v443_v58 = vmul.f32 %v442_v56, %v1084_v22  ;;  %468 = vst [vmem:[%s1062_s26 + $0x38] sm:$0xff] %v460_v57 }
 0x113   : > { %v445_v60 = vsel %vm444_vm2, %v1084_v22, %v443_v58 }
 0x114   : > { %v448_v61 = vsel %vm446_vm3, %v447_v59, %v445_v60 }
 0x115   : > { %467 = vst [vmem:[%s1062_s26 + $0x30] sm:$0xff] %v448_v61 }
 0x116   : > { %704 = shalt.err (!%p701_p4)
}
 0x117   : > { %s749_s21 = smov 128   ;;  %s750_s22 = smov 8  }
 0x118   : > { %581 = dma.vmem_to_hbm [thread:$0]  (%p811_p11), %s484_s10, 1024, %s486_s2, %s470_s3, %s749_s21, %s749_s21, %s750_s22  }
 0x119 PF: > { %s500_s23 = sand.u32 1, %s731_s6   ;;  %p1166_p7 = scmp.ge.s32.totalorder %s743_s9, 2 }
 0x11a   : > { %s501_s24 = scalar_lea.sflag [#allocation4], %s500_s23 }
 0x11b   : > { %p588_p5 = pnand %p1166_p7, %p815_p12 }
 0x11d   : > { %p589_p8 = pneg %p588_p5 }
 0x11f   : > { %726 = dma.done.wait (%p589_p8), %s501_s24, 1024  }
 0x120   : > { %728 = vsyncadd (%p589_p8), %s501_s24, 4294966272  ;;  %p14_p10 = scmp.ge.s32.totalorder %s786_s12, 4   ;;  %s1167_s6 = smov %s735_s7 }
 0x121   : > { %s1168_s7 = smov %s739_s8  ;;  %s1169_s8 = smov %s798_s15 }
 0x122   : > { %s1170_s9 = smov %s786_s12  ;;  %16 = sbr.rel (!%p14_p10) target bundleno = 5 (0x5), region = 69 }
 0x127   :  { %507 = vsyncpa [#allocation3], 1 }
 0x128   :  { %509 = vsyncpa [#allocation3 + $0x1], 1 }
 0x129   :  { %510 = vsyncpa [#allocation4], 1 }
 0x12a   :  { %512 = vsyncpa [#allocation4 + $0x1], 1 }

</bundles_post_ra>
